<compile_context>
chip_gen: v6e
topology: v6e:2x2x1
jax: 0.10.0
libtpu: 0.0.40
codegen_flags: <defaults>
</compile_context>

<pallas_src>
import numpy as np

import jax
import jax.numpy as jnp
from jax.experimental import pallas as pl
from jax.experimental.pallas import tpu as pltpu

LANE = 128  # TPU lane width.


def _round_up(n, m):
    return ((n + m - 1) // m) * m


def _cdiv(a, b):
    return (a + b - 1) // b


# ---------------------------------------------------------------------------
# Kernel: one batch tile through the whole MLP. Weights are VMEM-resident.
# ---------------------------------------------------------------------------
def encoder_kernel(x_ref,
                   w1_ref, b1_ref,
                   w2_ref, b2_ref,
                   wh_ref, bh_ref,
                   out_ref):
    # Cast the streamed f32 input to the compute dtype in-kernel (VPU),
    # avoiding a separate HBM round trip for a padded bf16 copy.
    x = x_ref[...].astype(w1_ref.dtype)

    # FC_input + ReLU   (bf16 operands, f32 accumulate, f32 epilogue)
    h = jnp.dot(x, w1_ref[...], preferred_element_type=jnp.float32) + b1_ref[...]
    h = jnp.maximum(h, 0.0).astype(w2_ref.dtype)

    # FC_input2 + ReLU
    h = jnp.dot(h, w2_ref[...], preferred_element_type=jnp.float32) + b2_ref[...]
    h = jnp.maximum(h, 0.0).astype(wh_ref.dtype)

    # Fused heads: [mean | log_var] in one lane-dense matmul + store.
    out = jnp.dot(h, wh_ref[...], preferred_element_type=jnp.float32) + bh_ref[...]
    out_ref[...] = out.astype(out_ref.dtype)


# ---------------------------------------------------------------------------
# Parameter handling
# ---------------------------------------------------------------------------
def init_encoder_params(key, input_dim, hidden_dim, latent_dim):
    """PyTorch-layout params (W: [out, in], b: [out]); default nn.Linear init."""
    def linear(k, fan_in, fan_out):
        kw, kb = jax.random.split(k)
        bound = 1.0 / jnp.sqrt(fan_in)
        w = jax.random.uniform(kw, (fan_out, fan_in), jnp.float32, -bound, bound)
        b = jax.random.uniform(kb, (fan_out,), jnp.float32, -bound, bound)
        return w, b

    k1, k2, k3, k4 = jax.random.split(key, 4)
    w1, b1 = linear(k1, input_dim, hidden_dim)
    w2, b2 = linear(k2, hidden_dim, hidden_dim)
    wm, bm = linear(k3, hidden_dim, latent_dim)
    wv, bv = linear(k4, hidden_dim, latent_dim)
    return dict(w1=w1, b1=b1, w2=w2, b2=b2, wm=wm, bm=bm, wv=wv, bv=bv,
                dims=(input_dim, hidden_dim, latent_dim))


def pack_encoder_params(raw, compute_dtype=jnp.bfloat16, hidden_align=None):
    """Transpose to [in, out], fuse the two heads, zero-pad hidden / head
    output dims, and cast weights to the compute dtype (biases stay f32).

    The input (contraction) dim of W1 is NOT padded: x is fed to the kernel
    with a full-extent feature block, so no padded copy of x is ever made.
    """
    input_dim, hidden_dim, latent_dim = raw["dims"]
    if hidden_align is None:
        # 256-align the K/N dim of the big middle matmul for v6e/v7x 2x256x256
        # MXUs; 128 is enough for small hidden dims (and for v5e's 128x128 MXU).
        hidden_align = 256 if hidden_dim > 128 else 128
    dp_h = _round_up(hidden_dim, hidden_align)
    dp_out = _round_up(2 * latent_dim, LANE)

    def pad_w(w_t, rows, cols):  # w_t: [in, out] -> zero-padded [rows, cols]
        out = jnp.zeros((rows, cols), jnp.float32)
        return out.at[:w_t.shape[0], :w_t.shape[1]].set(w_t).astype(compute_dtype)

    def pad_b(b, cols):
        out = jnp.zeros((1, cols), jnp.float32)
        return out.at[0, :b.shape[0]].set(b)

    w1 = pad_w(raw["w1"].T, input_dim, dp_h)   # [input_dim, dp_h] (K unpadded)
    b1 = pad_b(raw["b1"], dp_h)
    w2 = pad_w(raw["w2"].T, dp_h, dp_h)
    b2 = pad_b(raw["b2"], dp_h)
    # Fused head weight [hidden, 2*latent] = [Wm^T | Wv^T]
    wh = pad_w(jnp.concatenate([raw["wm"].T, raw["wv"].T], axis=1), dp_h, dp_out)
    bh = pad_b(jnp.concatenate([raw["bm"], raw["bv"]]), dp_out)

    return dict(w1=w1, b1=b1, w2=w2, b2=b2, wh=wh, bh=bh,
                dims=(input_dim, hidden_dim, latent_dim),
                padded_dims=(dp_h, dp_out),
                compute_dtype=compute_dtype)


# ---------------------------------------------------------------------------
# Tiling / budgeting helpers
# ---------------------------------------------------------------------------
def _choose_batch_tile(B, max_tile):
    b8 = _round_up(max(B, 1), 8)
    if b8 <= 8:
        return 8
    # Balance tiles so the last one isn't mostly padding.
    n_tiles = max(1, _cdiv(b8, max_tile))
    tb = _round_up(_cdiv(b8, n_tiles), 8)
    # v7x megacore: guarantee >= 2 "parallel" grid steps so both TensorCores
    # get work (harmless on single-TC v5e/v6e).
    if _cdiv(b8, tb) < 2:
        tb = max(8, _round_up(_cdiv(b8, 2), 8))
    return tb


# ---------------------------------------------------------------------------
# Wrapper
# ---------------------------------------------------------------------------
def encoder_forward(x, packed, *, max_batch_tile=512, out_dtype=jnp.float32):
    """x: [B, input_dim] float32. Returns (mean, log_var) float32 [B, latent_dim].

    Pass out_dtype=jnp.bfloat16 on bandwidth-bound chips (v5e) to halve the
    output-slab writeback; accumulation stays f32 in-kernel either way.
    """
    B, d_in = x.shape
    input_dim, hidden_dim, latent_dim = packed["dims"]
    assert d_in == input_dim
    dp_h, dp_out = packed["padded_dims"]

    tb = _choose_batch_tile(B, max_batch_tile)
    b_pad = _round_up(B, tb)
    if b_pad != B:
        # Batch-only padding (cheap; no feature padding, no dtype conversion).
        x = jnp.pad(x, ((0, b_pad - B), (0, 0)))

    grid = (b_pad // tb,)

    # Whole-array VMEM residency for weights/biases: one copy, single buffer
    # (no double buffering), stays in VMEM across all grid steps.
    resident = pl.BlockSpec(memory_space=pltpu.MemorySpace.VMEM)

    in_specs = [
        # x: pipelined per batch tile, full-extent feature block (no 128-pad needed).
        pl.BlockSpec((tb, input_dim), lambda i: (i, 0)),
        resident, resident,   # w1, b1
        resident, resident,   # w2, b2
        resident, resident,   # wh, bh (fused mean|log_var head)
    ]
    out_specs = pl.BlockSpec((tb, dp_out), lambda i: (i, 0))

    # Explicit VMEM budget: single-buffered residents + double-buffered x/out
    # tiles, with ~25% headroom (keeps compiles working past the 16/32 MiB
    # default scoped limits; clamp below physical VMEM).
    out_isize = np.dtype(out_dtype).itemsize
    weight_bytes = sum(int(packed[k].size) * packed[k].dtype.itemsize
                       for k in ("w1", "b1", "w2", "b2", "wh", "bh"))
    stream_bytes = 2 * tb * input_dim * x.dtype.itemsize + 2 * tb * dp_out * out_isize
    vmem_limit = int(1.25 * (weight_bytes + stream_bytes))
    vmem_limit = min(max(vmem_limit, 16 * 2**20), 127 * 2**20)
    # TODO(synk): if weights exceed ~half of v7x's 64 MiB VMEM (hidden >= ~4k),
    # switch from fully-resident weights to a K-tiled reduction grid axis.

    flops = 2 * b_pad * (input_dim * dp_h + dp_h * dp_h + dp_h * dp_out)
    bytes_accessed = (b_pad * input_dim * x.dtype.itemsize
                      + weight_bytes
                      + b_pad * dp_out * out_isize)

    out = pl.pallas_call(
        encoder_kernel,
        out_shape=jax.ShapeDtypeStruct((b_pad, dp_out), out_dtype),
        grid_spec=pl.GridSpec(grid=grid, in_specs=in_specs, out_specs=out_specs),
        compiler_params=pltpu.CompilerParams(
            dimension_semantics=("parallel",),
            vmem_limit_bytes=vmem_limit),
        cost_estimate=pl.CostEstimate(flops=flops, transcendentals=0,
                                      bytes_accessed=bytes_accessed),
    )(x, packed["w1"], packed["b1"], packed["w2"], packed["b2"],
      packed["wh"], packed["bh"])

    mean = out[:B, :latent_dim].astype(jnp.float32)
    log_var = out[:B, latent_dim:2 * latent_dim].astype(jnp.float32)
    return mean, log_var


# ---------------------------------------------------------------------------
# Pure-JAX reference (same bf16-operand / f32-accumulate numerics as the kernel)
# ---------------------------------------------------------------------------
def encoder_reference(x, raw, compute_dtype=jnp.bfloat16):
    c = lambda a: a.astype(compute_dtype).astype(jnp.float32)
    h = jnp.maximum(c(x) @ c(raw["w1"]).T + raw["b1"], 0.0)
    h = jnp.maximum(c(h) @ c(raw["w2"]).T + raw["b2"], 0.0)
    h = c(h)
    mean = h @ c(raw["wm"]).T + raw["bm"]
    log_var = h @ c(raw["wv"]).T + raw["bv"]
    return mean, log_var


if __name__ == "__main__":
    key = jax.random.PRNGKey(0)
    k_params, k_x = jax.random.split(key)

    # Small test shapes (exercises batch padding + a 2-step "parallel" grid).
    batch, input_dim, hidden_dim, latent_dim = 24, 16, 32, 8

    raw = init_encoder_params(k_params, input_dim, hidden_dim, latent_dim)
    packed = pack_encoder_params(raw, compute_dtype=jnp.bfloat16)
    x = jax.random.normal(k_x, (batch, input_dim), jnp.float32)

    mean, log_var = encoder_forward(x, packed)
    jax.block_until_ready((mean, log_var))

    ref_mean, ref_logvar = encoder_reference(x, raw, compute_dtype=jnp.bfloat16)
    assert mean.shape == (batch, latent_dim)
    assert log_var.shape == (batch, latent_dim)
    assert jnp.allclose(mean, ref_mean, atol=1e-2, rtol=1e-2), "mean mismatch"
    assert jnp.allclose(log_var, ref_logvar, atol=1e-2, rtol=1e-2), "log_var mismatch"

    print("KERNEL_OK")
</pallas_src>

<mosaic_0001>
module attributes {stable_mosaic.version = 11 : i64} {
  func.func @encoder_kernel(%arg0: i32, %arg1: memref<16x16xf32, #tpu.memory_space<vmem>>, %arg2: memref<16x128xbf16, #tpu.memory_space<vmem>>, %arg3: memref<1x128xf32, #tpu.memory_space<vmem>>, %arg4: memref<128x128xbf16, #tpu.memory_space<vmem>>, %arg5: memref<1x128xf32, #tpu.memory_space<vmem>>, %arg6: memref<128x128xbf16, #tpu.memory_space<vmem>>, %arg7: memref<1x128xf32, #tpu.memory_space<vmem>>, %arg8: memref<16x128xf32, #tpu.memory_space<vmem>>) attributes {dimension_semantics = [#tpu.dimension_semantics<parallel>], iteration_bounds = array<i64: 2>, scalar_prefetch = 0 : i64, scratch_operands = 0 : i64, tpu.core_type = #tpu.core_type<tc>, window_params = [{transform_indices = @transform_0, window_bounds = array<i64: 16, 16>}, {pipeline_mode = #tpu.pipeline_mode<synchronous>, transform_indices = @transform_1, window_bounds = array<i64: 16, 128>}, {pipeline_mode = #tpu.pipeline_mode<synchronous>, transform_indices = @transform_2, window_bounds = array<i64: 1, 128>}, {pipeline_mode = #tpu.pipeline_mode<synchronous>, transform_indices = @transform_3, window_bounds = array<i64: 128, 128>}, {pipeline_mode = #tpu.pipeline_mode<synchronous>, transform_indices = @transform_4, window_bounds = array<i64: 1, 128>}, {pipeline_mode = #tpu.pipeline_mode<synchronous>, transform_indices = @transform_5, window_bounds = array<i64: 128, 128>}, {pipeline_mode = #tpu.pipeline_mode<synchronous>, transform_indices = @transform_6, window_bounds = array<i64: 1, 128>}, {transform_indices = @transform_7, window_bounds = array<i64: 16, 128>}]} {
    %c0 = arith.constant 0 : index
    %c0_0 = arith.constant 0 : index
    %0 = vector.load %arg1[%c0, %c0_0] : memref<16x16xf32, #tpu.memory_space<vmem>>, vector<16x16xf32>
    %1 = arith.truncf %0 : vector<16x16xf32> to vector<16x16xbf16>
    %c0_1 = arith.constant 0 : index
    %c0_2 = arith.constant 0 : index
    %2 = vector.load %arg2[%c0_1, %c0_2] : memref<16x128xbf16, #tpu.memory_space<vmem>>, vector<16x128xbf16>
    %cst = arith.constant dense<0.000000e+00> : vector<16x128xf32>
    %3 = tpu.matmul %1, %2, %cst {dimension_numbers = #tpu.dot_dimension_numbers<[1], [0], [0], [1], [0, 0, 1, 1], [], []>} : vector<16x16xbf16>, vector<16x128xbf16>, vector<16x128xf32> -> vector<16x128xf32>
    %c0_3 = arith.constant 0 : index
    %c0_4 = arith.constant 0 : index
    %4 = vector.load %arg3[%c0_3, %c0_4] : memref<1x128xf32, #tpu.memory_space<vmem>>, vector<1x128xf32>
    %5 = vector.broadcast %4 : vector<1x128xf32> to vector<16x128xf32>
    %6 = arith.addf %3, %5 : vector<16x128xf32>
    %cst_5 = arith.constant 0.000000e+00 : f32
    %7 = vector.broadcast %cst_5 : f32 to vector<16x128xf32>
    %8 = arith.maximumf %6, %7 : vector<16x128xf32>
    %9 = arith.truncf %8 : vector<16x128xf32> to vector<16x128xbf16>
    %c0_6 = arith.constant 0 : index
    %c0_7 = arith.constant 0 : index
    %10 = vector.load %arg4[%c0_6, %c0_7] : memref<128x128xbf16, #tpu.memory_space<vmem>>, vector<128x128xbf16>
    %cst_8 = arith.constant dense<0.000000e+00> : vector<16x128xf32>
    %11 = tpu.matmul %9, %10, %cst_8 {dimension_numbers = #tpu.dot_dimension_numbers<[1], [0], [0], [1], [0, 0, 1, 1], [], []>} : vector<16x128xbf16>, vector<128x128xbf16>, vector<16x128xf32> -> vector<16x128xf32>
    %c0_9 = arith.constant 0 : index
    %c0_10 = arith.constant 0 : index
    %12 = vector.load %arg5[%c0_9, %c0_10] : memref<1x128xf32, #tpu.memory_space<vmem>>, vector<1x128xf32>
    %13 = vector.broadcast %12 : vector<1x128xf32> to vector<16x128xf32>
    %14 = arith.addf %11, %13 : vector<16x128xf32>
    %cst_11 = arith.constant 0.000000e+00 : f32
    %15 = vector.broadcast %cst_11 : f32 to vector<16x128xf32>
    %16 = arith.maximumf %14, %15 : vector<16x128xf32>
    %17 = arith.truncf %16 : vector<16x128xf32> to vector<16x128xbf16>
    %c0_12 = arith.constant 0 : index
    %c0_13 = arith.constant 0 : index
    %18 = vector.load %arg6[%c0_12, %c0_13] : memref<128x128xbf16, #tpu.memory_space<vmem>>, vector<128x128xbf16>
    %cst_14 = arith.constant dense<0.000000e+00> : vector<16x128xf32>
    %19 = tpu.matmul %17, %18, %cst_14 {dimension_numbers = #tpu.dot_dimension_numbers<[1], [0], [0], [1], [0, 0, 1, 1], [], []>} : vector<16x128xbf16>, vector<128x128xbf16>, vector<16x128xf32> -> vector<16x128xf32>
    %c0_15 = arith.constant 0 : index
    %c0_16 = arith.constant 0 : index
    %20 = vector.load %arg7[%c0_15, %c0_16] : memref<1x128xf32, #tpu.memory_space<vmem>>, vector<1x128xf32>
    %21 = vector.broadcast %20 : vector<1x128xf32> to vector<16x128xf32>
    %22 = arith.addf %19, %21 : vector<16x128xf32>
    %c0_17 = arith.constant 0 : index
    %c0_18 = arith.constant 0 : index
    %23 = vector.load %arg8[%c0_17, %c0_18] : memref<16x128xf32, #tpu.memory_space<vmem>>, vector<16x128xf32>
    tpu.vector_store %arg8[%c0_17, %c0_18], %22 {strides = array<i32>} : memref<16x128xf32, #tpu.memory_space<vmem>>, vector<16x128xf32>,
    return
  }
  func.func @transform_0(%arg0: i32) -> (i32, i32) {
    %c0_i32 = arith.constant 0 : i32
    %c0_i32_0 = arith.constant 0 : i32
    return %arg0, %c0_i32 : i32, i32
  }
  func.func @transform_1(%arg0: i32) -> (i32, i32) {
    %c0_i32 = arith.constant 0 : i32
    %c0_i32_0 = arith.constant 0 : i32
    %c0_i32_1 = arith.constant 0 : i32
    return %c0_i32, %c0_i32_0 : i32, i32
  }
  func.func @transform_2(%arg0: i32) -> (i32, i32) {
    %c0_i32 = arith.constant 0 : i32
    %c0_i32_0 = arith.constant 0 : i32
    %c0_i32_1 = arith.constant 0 : i32
    return %c0_i32, %c0_i32_0 : i32, i32
  }
  func.func @transform_3(%arg0: i32) -> (i32, i32) {
    %c0_i32 = arith.constant 0 : i32
    %c0_i32_0 = arith.constant 0 : i32
    %c0_i32_1 = arith.constant 0 : i32
    return %c0_i32, %c0_i32_0 : i32, i32
  }
  func.func @transform_4(%arg0: i32) -> (i32, i32) {
    %c0_i32 = arith.constant 0 : i32
    %c0_i32_0 = arith.constant 0 : i32
    %c0_i32_1 = arith.constant 0 : i32
    return %c0_i32, %c0_i32_0 : i32, i32
  }
  func.func @transform_5(%arg0: i32) -> (i32, i32) {
    %c0_i32 = arith.constant 0 : i32
    %c0_i32_0 = arith.constant 0 : i32
    %c0_i32_1 = arith.constant 0 : i32
    return %c0_i32, %c0_i32_0 : i32, i32
  }
  func.func @transform_6(%arg0: i32) -> (i32, i32) {
    %c0_i32 = arith.constant 0 : i32
    %c0_i32_0 = arith.constant 0 : i32
    %c0_i32_1 = arith.constant 0 : i32
    return %c0_i32, %c0_i32_0 : i32, i32
  }
  func.func @transform_7(%arg0: i32) -> (i32, i32) {
    %c0_i32 = arith.constant 0 : i32
    %c0_i32_0 = arith.constant 0 : i32
    return %arg0, %c0_i32 : i32, i32
  }
}

</mosaic_0001>

<bundles_post_ra>
// kernel: tpu_custom_call.1
= control target key start
LH: loop header
LB: loop body
LE: loop exit
PB: predicated region body
PF: predicated region fallthrough
CT: control target
= control target key end

     0   :  { %12 = vsyncpa [#allocation3], 0  ;;  %s1239_s0 = inlined_call_operand.vmem [shape: f32[32,16], index: 0, kind: input, shape index: {}]   ;;  %s1240_s1 = inlined_call_operand.vmem [shape: bf16[16,128], index: 1, kind: input, shape index: {}]   ;;  %s1241_s2 = inlined_call_operand.vmem [shape: f32[1,128], index: 2, kind: input, shape index: {}]   ;;  %s1242_s3 = inlined_call_operand.hbm [shape: bf16[128,128], index: 3, kind: input, shape index: {}]   ;;  %s1243_s4 = inlined_call_operand.vmem [shape: f32[1,128], index: 4, kind: input, shape index: {}]   ;;  %s1244_s5 = inlined_call_operand.hbm [shape: bf16[128,128], index: 5, kind: input, shape index: {}]   ;;  %s1245_s6 = inlined_call_operand.vmem [shape: f32[1,128], index: 6, kind: input, shape index: {}]   ;;  %s1246_s7 = inlined_call_operand.hbm [shape: f32[32,128], index: 7, kind: output, shape index: {}]  }
   0x1   :  { %13 = vsyncpa [#allocation6], 0 }
   0x2   :  { %14 = vsyncpa [#allocation4], 0 }
   0x3   :  { %16 = vsyncpa [#allocation4 + $0x1], 0  ;;  %s1062_s24 = smov 0   ;;  %s1064_s25 = smov 0  }
   0x4   :  { %s1066_s26 = smov 0   ;;  %s1068_s27 = smov 0  }
   0x5 LB: > { %s1083_s28 = sadd.s32 4294967295, %s1011_s27   ;;  %s704_s29 = sadd.s32 4294967294, %s1011_s27   ;;  %s1011_s27 = sphi %s1068_s27, %s1260_s27   ;;  %s1007_s26 = sphi %s1066_s26, %s1259_s26   ;;  %s1003_s25 = sphi %s1064_s25, %s1258_s25   ;;  %s999_s24 = sphi %s1062_s24, %s1257_s24  }
   0x6   : > { %s1087_s30 = sadd.s32 1, %s1011_s27   ;;  %s181_s8 = sadd.s32 1, %s1007_s26 }
   0x7   : > { %s178_s9 = ssub.s32 %s1011_s27, %s1087_s30  ;;  %p191_p0 = scmp.ne.s32.totalorder %s1007_s26, %s1003_s25 }
   0x8   : > { %p179_p1 = scmp.eq.s32.totalorder %s178_s9, 0  ;;  %p192_p2 = scmp.eq.s32.totalorder %s1083_s28, 1 }
   0x9   : > { %p197_p3 = scmp.ne.s32.totalorder %s1003_s25, %s999_s24  ;;  %p198_p4 = scmp.eq.s32.totalorder %s704_s29, 1 }
   0xa   : > { %s1098_s10 = scalar_select %p179_p1, %s1007_s26, %s181_s8  }
   0xb   : > { %p1100_p5 = por %p192_p2, %p191_p0  ;;  %p1104_p6 = por %p198_p4, %p197_p3 }
   0xc   : > { %p705_p7 = scmp.ge.s32.totalorder %s1011_s27, 1  ;;  %p205_p8 = scmp.lt.s32.totalorder %s1011_s27, 3 }
   0xd   : > { %s1249_s12 = scalar_select %p1104_p6, 1, 0 }
   0xe   : > { %p1247_p9 = scmp.eq.s32.totalorder %s1083_s28, 0  ;;  %p1111_p10 = pnand %p705_p7, %p205_p8 }
   0xf   : > { %s1013_s14 = smov [#allocation2]   ;;  %s1014_s17 = smov [#allocation5]  }
  0x10   : > { %s223_s15 = sshll.u32 %s1013_s14, 4  ;;  %p818_p11 = pneg %p1111_p10  ;;  %s224_s15 = int_to_ptr.vmem [resolvable:$true] %s223_s15 }
  0x11   : > { %s239_s18 = sshll.u32 %s1014_s17, 4  ;;  %s902_s19 = scalar_lea.vmem %s224_s15, 1024  ;;  %s240_s18 = int_to_ptr.vmem [resolvable:$true] %s239_s18 }
  0x12   : > { %p1119_p12 = pnand %p1247_p9, %p818_p11  ;;  %p903_p0 = scmp.ne.s32.totalorder %s224_s15, %s902_s19 }
  0x13   : > { %p910_p3 = scmp.lt.s32.totalorder %s224_s15, %s224_s15  ;;  %p911_p4 = scmp.lt.s32.totalorder %s902_s19, %s902_s19 }
  0x14   : > { %p893_p13 = pneg %p1119_p12 }
  0x15   : > { %p912_p7 = por %p911_p4, %p910_p3 }
  0x16   : > { %p905_p1 = pnand %p903_p0, %p893_p13 }
  0x18   : > { %p906_p2 = pneg %p905_p1 }
  0x1a   : > { %p913_p8 = pnand %p912_p7, %p906_p2 }
  0x1c   : > { %916 = shalt.err (!%p913_p8)
}
  0x1d   : > { %s1015_s20 = smov 64   ;;  %s1016_s21 = smov 4  }
  0x1e   : > { %821 = dma.hbm_to_vmem [thread:$0]  (!%p1119_p12), %s1242_s3, 1024, %s224_s15, [#allocation3], %s1015_s20, %s1015_s20, %s1016_s21  }
  0x1f   : > { %s928_s29 = scalar_lea.vmem %s240_s18, 1024  ;;  %p936_p9 = scmp.lt.s32.totalorder %s240_s18, %s240_s18 }
  0x20   : > { %p929_p11 = scmp.ne.s32.totalorder %s240_s18, %s928_s29  ;;  %p937_p6 = scmp.lt.s32.totalorder %s928_s29, %s928_s29 }
  0x22   : > { %p931_p0 = pnand %p929_p11, %p893_p13  ;;  %p938_p3 = por %p937_p6, %p936_p9 }
  0x24   : > { %p932_p1 = pneg %p931_p0 }
  0x26   : > { %p939_p2 = pnand %p938_p3, %p932_p1 }
  0x28   : > { %942 = shalt.err (!%p939_p2)
}
  0x29   : > { %824 = dma.hbm_to_vmem [thread:$0]  (!%p1119_p12), %s1244_s5, 1024, %s240_s18, [#allocation6], %s1015_s20, %s1015_s20, %s1016_s21  }
  0x2a   : > { %267 = sbr.rel (%p1111_p10) target bundleno = 679 (0x2a7), region = 48  ;;  %p1252_p4 = scmp.eq.s32.totalorder (!%p1111_p10), %s1083_s28, 0 }
  0x2f   : > { %986 = dma.done.wait (%p1252_p4), [#allocation3], 1024   ;;  %p1253_p13 = pmov %p1252_p4 }
  0x30   : > { %p1254_p7 = pmov %p1252_p4 }
  0x31   : > { %988 = vsyncadd (%p1253_p13), [#allocation3], 4294966272 }
  0x32   : > { %990 = dma.done.wait (%p1254_p7), [#allocation6], 1024   ;;  %p1255_p6 = pmov %p1252_p4 }
  0x33   : > { %s713_s14 = sshll.u32 %s1083_s28, 1  ;;  %v1017_v0 = vmov 0.0   ;;  %vm1018_vm0 = vmmov 0   ;;  %v874_v1 = vld [vmem:[%s1240_s1] sm:$0xff]   ;;  %vm329_vm1 = vcmask 130048   ;;  %v875_v5 = vld [vmem:[#allocation2 + $0x38] sm:$0xff]  }
  0x34   : > { %992 = vsyncadd (%p1255_p6), [#allocation6], 4294966272  ;;  %762 = vmatprep.subr.bf16.mxu0 %v1017_v0  ;;  %764 = vmatprep.mubr.msk.bf16.mxu0 %vm1018_vm0, %v1017_v0  ;;  %p304_p9 = scmp.lt.s32.totalorder %s713_s14, 3  ;;  %v876_v6 = vld [vmem:[#allocation2 + $0x30] sm:$0xff]   ;;  %v877_v7 = vld [vmem:[#allocation2 + $0x28] sm:$0xff]   ;;  %s300_s29 = sand.u32 1, %s1003_s25  }
  0x35   : > { %768 = vmatprep.subr.bf16.mxu1 %v1017_v0  ;;  %784 = vmatprep.mubr.msk.bf16.mxu1 %vm1018_vm0, %v1017_v0  ;;  %v878_v8 = vld [vmem:[#allocation2 + $0x20] sm:$0xff]   ;;  %v879_v9 = vld [vmem:[#allocation2 + $0x18] sm:$0xff]   ;;  %v880_v10 = vld [vmem:[#allocation2 + $0x10] sm:$0xff]   ;;  %s712_s8 = sshll.u32 %s300_s29, 4  ;;  %s741_s16 = sshll.u32 %s1083_s28, 8 }
  0x36   : > { %s1262_s14 = smov (!%p304_p9, %s713_s14), 3  ;;  %763 = vmatpush3.bf16.msra.mxu0 %v874_v1  ;;  %769 = vmatpush3.bf16.msra.mxu1 %v875_v5  ;;  %v881_v11 = vld [vmem:[#allocation2 + $0x8] sm:$0xff]   ;;  %v882_v12 = vld [vmem:[#allocation2] sm:$0xff]   ;;  %v883_v13 = vld [vmem:[#allocation5 + $0x38] sm:$0xff]   ;;  %s1197_s19 = scalar_lea.hbm %s1246_s7, %s741_s16 }
  0x37   : > { %s714_s13 = sshll.u32 %s1262_s14, 3  ;;  %788 = vmatprep.subr.bf16.mxu0 %v1017_v0  ;;  %770 = vmatprep.subr.bf16.mxu1 %v1017_v0  ;;  %v884_v14 = vld [vmem:[#allocation5 + $0x30] sm:$0xff]   ;;  %v885_v15 = vld [vmem:[#allocation5 + $0x28] sm:$0xff]   ;;  %v886_v16 = vld [vmem:[#allocation5 + $0x20] sm:$0xff]   ;;  %s1199_s20 = scalar_lea.sflag [#allocation4], %s300_s29 }
  0x38   : > { %s307_s17 = scalar_lea.vmem %s1239_s0, %s714_s13  ;;  %v887_v17 = vld [vmem:[#allocation5 + $0x18] sm:$0xff]   ;;  %v715_v18 = vld [vmem:[%s1241_s2] ss:$0 sm:$0xff]  ;;  %v888_v28 = vld [vmem:[#allocation5 + $0x10] sm:$0xff]   ;;  %s302_s13 = scalar_lea.vmem [#allocation7], %s712_s8 }
  0x39   : > { %v311_v2 = vld [vmem:[%s307_s17] sm:$0xff]  ;;  %v312_v3 = vld [vmem:[%s307_s17 + $0x8] sm:$0xff]  ;;  %s620_s15 = sshll.u32 %s302_s13, 4  ;;  %s1019_s28 = smov [#allocation7]   ;;  %s1192_s15 = int_to_ptr.vmem [resolvable:$true] %s620_s15 }
  0x3a   : > { %v313_v4 = vpack.c.bf16 %v312_v3, %v311_v2  ;;  %771 = vmatpush3.bf16.msra.mxu1 %v876_v6  ;;  %v889_v29 = vld [vmem:[#allocation5 + $0x8] sm:$0xff]   ;;  %v890_v30 = vld [vmem:[#allocation5] sm:$0xff]   ;;  %s943_s21 = scalar_lea.vmem %s1192_s15, 256  ;;  %s947_s22 = sshll.u32 %s1019_s28, 4  ;;  %s948_s22 = int_to_ptr.vmem [resolvable:$false] %s947_s22 }
  0x3b   : > { %772 = vmatprep.subr.bf16.mxu1 %v1017_v0  ;;  %v718_v31 = vld [vmem:[%s1243_s4] ss:$0 sm:$0xff]  ;;  %p944_p10 = scmp.ne.s32.totalorder %s1192_s15, %s943_s21  ;;  %s949_s23 = scalar_lea.vmem %s948_s22, 512 }
  0x3c   : > { %765 = vmatmul.mubr.msk.bf16.vlgmr.msra.gmra.mxu0 %vm329_vm1, %v313_v4  ;;  %v727_v41 = vld [vmem:[%s1245_s6] ss:$0 sm:$0xff]  ;;  %p950_p11 = scmp.lt.s32.totalorder %s1192_s15, %s948_s22  ;;  %p951_p0 = scmp.lt.s32.totalorder %s949_s23, %s943_s21 }
  0x3d   : > { %804 = vmatprep.mubr.msk.bf16.mxu0 %vm1018_vm0, %v1017_v0  ;;  %789 = vmatpush3.bf16.msra.mxu0 %v883_v13  ;;  %p945_p12 = pnand %p944_p10, %p1100_p5 }
  0x3e   : > { %773 = vmatpush3.bf16.msra.mxu1 %v877_v7  ;;  %790 = vmatprep.subr.bf16.mxu0 %v1017_v0  ;;  %p952_p1 = por %p951_p0, %p950_p11 }
  0x3f   : > { %774 = vmatprep.subr.bf16.mxu1 %v1017_v0  ;;  %p946_p8 = pneg %p945_p12 }
  0x41   : > { %791 = vmatpush3.bf16.msra.mxu0 %v884_v14  ;;  %p953_p3 = pnand %p952_p1, %p946_p8 }
  0x42   : > { %775 = vmatpush3.bf16.msra.mxu1 %v878_v8  ;;  %792 = vmatprep.subr.bf16.mxu0 %v1017_v0 }
  0x43   : > { %776 = vmatprep.subr.bf16.mxu1 %v1017_v0 }
  0x45   : > { %793 = vmatpush3.bf16.msra.mxu0 %v885_v15 }
  0x46   : > { %777 = vmatpush3.bf16.msra.mxu1 %v879_v9  ;;  %794 = vmatprep.subr.bf16.mxu0 %v1017_v0 }
  0x47   : > { %778 = vmatprep.subr.bf16.mxu1 %v1017_v0 }
  0x49   : > { %795 = vmatpush3.bf16.msra.mxu0 %v886_v16 }
  0x4a   : > { %779 = vmatpush3.bf16.msra.mxu1 %v880_v10  ;;  %796 = vmatprep.subr.bf16.mxu0 %v1017_v0 }
  0x4b   : > { %780 = vmatprep.subr.bf16.mxu1 %v1017_v0 }
  0x4d   : > { %797 = vmatpush3.bf16.msra.mxu0 %v887_v17 }
  0x4e   : > { %781 = vmatpush3.bf16.msra.mxu1 %v881_v11  ;;  %798 = vmatprep.subr.bf16.mxu0 %v1017_v0 }
  0x4f   : > { %782 = vmatprep.subr.bf16.mxu1 %v1017_v0 }
  0x51   : > { %799 = vmatpush3.bf16.msra.mxu0 %v888_v28 }
  0x52   : > { %783 = vmatpush3.bf16.msra.mxu1 %v882_v12  ;;  %800 = vmatprep.subr.bf16.mxu0 %v1017_v0 }
  0x55   : > { %801 = vmatpush3.bf16.msra.mxu0 %v889_v29 }
  0x56   : > { %802 = vmatprep.subr.bf16.mxu0 %v1017_v0 }
  0x59   : > { %803 = vmatpush3.bf16.msra.mxu0 %v890_v30 }
  0xfc   : > { %v367_v19 = vpop.f32.mrf.mxu0 }
  0xfd   : > { %v368_v21 = vadd.f32 %v715_v18, %v367_v19 }
  0xfe   : > { %v766_v20 = vpop.f32.mrf.mxu0 }
  0xff   : > { %v374_v25 = vmax.f32 %v368_v21, 0.0 }
 0x100   : > { %v370_v22 = vpop.f32.mrf.mxu0 }
 0x101   : > { %v371_v23 = vadd.f32 %v715_v18, %v370_v22 }
 0x102   : > { %v767_v24 = vpop.f32.mrf.mxu0 }
 0x103   : > { %v375_v26 = vmax.f32 %v371_v23, 0.0 }
 0x105   : > { %v376_v27 = vpack.c.bf16 %v375_v26, %v374_v25 }
 0x107   : > { %785 = vmatmul.mubr.bf16.vlgmr.msra.gmra.mxu1 %v376_v27 }
 0x1c7   : > { %v482_v32 = vpop.f32.mrf.mxu1 }
 0x1c8   : > { %v483_v34 = vadd.f32 %v718_v31, %v482_v32 }
 0x1c9   : > { %v786_v33 = vpop.f32.mrf.mxu1 }
 0x1ca   : > { %v489_v38 = vmax.f32 %v483_v34, 0.0 }
 0x1cb   : > { %v485_v35 = vpop.f32.mrf.mxu1 }
 0x1cc   : > { %v486_v36 = vadd.f32 %v718_v31, %v485_v35 }
 0x1cd   : > { %v787_v37 = vpop.f32.mrf.mxu1 }
 0x1ce   : > { %v490_v39 = vmax.f32 %v486_v36, 0.0 }
 0x1d0   : > { %v491_v40 = vpack.c.bf16 %v490_v39, %v489_v38 }
 0x1d2   : > { %805 = vmatmul.mubr.bf16.vlgmr.msra.gmra.mxu0 %v491_v40 }
 0x292   : > { %v597_v42 = vpop.f32.mrf.mxu0 }
 0x293   : > { %v598_v43 = vadd.f32 %v727_v41, %v597_v42 }
 0x294   : > { %v806_v44 = vpop.f32.mrf.mxu0 }
 0x295   : > { %604 = vst [vmem:[%s302_s13] sm:$0xff] %v598_v43 }
 0x296   : > { %v600_v45 = vpop.f32.mrf.mxu0 }
 0x297   : > { %v601_v46 = vadd.f32 %v727_v41, %v600_v45 }
 0x298   : > { %v807_v47 = vpop.f32.mrf.mxu0 }
 0x299   : > { %605 = vst [vmem:[%s302_s13 + $0x8] sm:$0xff] %v601_v46 }
 0x29a   : > { %956 = shalt.err (!%p953_p3)
}
 0x29b   : > { %s957_s29 = scalar_lea.hbm %s1197_s19, 256  ;;  %s961_s14 = scalar_lea.hbm %s1246_s7, 512 }
 0x29c   : > { %p958_p2 = scmp.ne.s32.totalorder %s1197_s19, %s957_s29  ;;  %p962_p7 = scmp.lt.s32.totalorder %s1197_s19, %s1246_s7 }
 0x29d   : > { %p963_p6 = scmp.lt.s32.totalorder %s961_s14, %s957_s29 }
 0x29e   : > { %p959_p4 = pnand %p958_p2, %p1100_p5 }
 0x29f   : > { %p964_p9 = por %p963_p6, %p962_p7 }
 0x2a0   : > { %p960_p13 = pneg %p959_p4 }
 0x2a2   : > { %p965_p10 = pnand %p964_p9, %p960_p13 }
 0x2a4   : > { %968 = shalt.err (!%p965_p10)
}
 0x2a5   : > { %s1020_s17 = smov 128   ;;  %s1021_s18 = smov 8  }
 0x2a6   : > { %816 = dma.vmem_to_hbm [thread:$0]  (%p1100_p5), %s1192_s15, 256, %s1197_s19, %s1199_s20, %s1020_s17, %s1020_s17, %s1021_s18  }
 0x2a7 PF: > { %p833_p12 = scmp.ge.s32.totalorder %s1011_s27, 2  ;;  %s635_s21 = sand.u32 1, %s999_s24  }
 0x2a8   : > { %p1256_p8 = scmp.ne.s32.totalorder %s1249_s12, 0  ;;  %s636_s28 = scalar_lea.sflag [#allocation4], %s635_s21 }
 0x2aa   : > { %p826_p11 = pnand %p833_p12, %p1256_p8 }
 0x2ac   : > { %p827_p0 = pneg %p826_p11 }
 0x2ae   : > { %994 = dma.done.wait (%p827_p0), %s636_s28, 256  }
 0x2af   : > { %996 = vsyncadd (%p827_p0), %s636_s28, 4294967040  ;;  %p19_p1 = scmp.ge.s32.totalorder %s1087_s30, 4   ;;  %s1257_s24 = smov %s1003_s25 }
 0x2b0   : > { %s1258_s25 = smov %s1007_s26  ;;  %s1259_s26 = smov %s1098_s10 }
 0x2b1   : > { %s1260_s27 = smov %s1087_s30  ;;  %21 = sbr.rel (!%p19_p1) target bundleno = 5 (0x5), region = 92 }
 0x2b6   :  { %641 = vsyncpa [#allocation3], 1 }
 0x2b7   :  { %643 = vsyncpa [#allocation3 + $0x1], 1 }
 0x2b8   :  { %644 = vsyncpa [#allocation6], 1 }
 0x2b9   :  { %645 = vsyncpa [#allocation4], 1 }
 0x2ba   :  { %647 = vsyncpa [#allocation4 + $0x1], 1 }

</bundles_post_ra>
